<compile_context>
chip_gen: v7x
topology: tpu7x:2x2x1
jax: 0.10.0
libtpu: 0.0.40
codegen_flags: <defaults>
</compile_context>

<pallas_src>
import functools

import jax
import jax.numpy as jnp
from jax.experimental import pallas as pl
from jax.experimental.pallas import tpu as pltpu


def _fused_conv_block_kernel(x_ref, b1_ref, b2_ref, t1_ref, t2_ref, o_ref, *,
                             B, H, W, c_in, c_out):
    """B images per step, both conv3x3+BN+ReLU stages fused in VMEM.

    x_ref:  (B, H, W*c_in)        bf16 input, width-channel packed
    b1_ref: (3, W*c_in,  W*c_out) bf16 banded weights per kh tap (BN scale folded)
    b2_ref: (3, W*c_out, W*c_out) bf16 banded weights per kh tap (BN scale folded)
    t*_ref: (1, W*c_out)          f32 folded BN shift, tiled along W
    o_ref:  (B, H, W*c_out)       f32 output, width-channel packed (lane-dense)
    """
    BH = B * H
    wci = W * c_in
    wco = W * c_out

    # Row index within each image: masks the +-1 sublane rolls below so the
    # H-border rows see zero (SAME padding) and nothing leaks across images.
    row = jax.lax.broadcasted_iota(jnp.int32, (BH, 1), 0) % H
    not_top = row >= 1
    not_bot = row <= H - 2

    def conv3x3(x2d, b_ref):
        # x2d: (BH, K) bf16, b_ref: (3, K, wco) bf16.
        # One aligned large-M MXU matmul per kh tap; the row shift of the 3x3
        # window is done on the matmul OUTPUTS (XLU roll + VPU select), so the
        # MXU LHS reads are never sublane-misaligned.
        p0 = jnp.dot(x2d, b_ref[0], preferred_element_type=jnp.float32)
        p1 = jnp.dot(x2d, b_ref[1], preferred_element_type=jnp.float32)
        p2 = jnp.dot(x2d, b_ref[2], preferred_element_type=jnp.float32)
        up = pltpu.roll(p0, shift=1, axis=0)        # row h <- p0[h-1]
        dn = pltpu.roll(p2, shift=BH - 1, axis=0)   # row h <- p2[h+1] (== -1 mod BH)
        return p1 + jnp.where(not_top, up, 0.0) + jnp.where(not_bot, dn, 0.0)

    # ---------------- stage 1: conv3x3 + BN + ReLU ----------------
    x2d = x_ref[...].reshape(BH, wci)
    y1 = jnp.maximum(conv3x3(x2d, b1_ref) + t1_ref[...], 0.0)

    # -------- stage 2: conv3x3 + BN + ReLU (input never leaves VMEM) --------
    y2 = jnp.maximum(conv3x3(y1.astype(jnp.bfloat16), b2_ref) + t2_ref[...], 0.0)
    o_ref[...] = y2.reshape(B, H, wco).astype(o_ref.dtype)


def _make_banded_weights(w, width):
    """Fold the kw taps + SAME width padding of a 3x3 conv into a banded matrix.

    w: (3, 3, c_in, c_out) HWIO conv weight.
    Returns B of shape (3, width*c_in, width*c_out) with
      B[kh, wi*c_in + ci, wo*c_out + co] = w[kh, kw, ci, co]  iff wi == wo+kw-1
    so a stride-1 SAME conv along W is y[h] = sum_kh x_hpad[h+kh] @ B[kh].
    """
    kh_, kw_, c_in, c_out = w.shape
    wi = jnp.arange(width)[:, None]
    wo = jnp.arange(width)[None, :]
    b = jnp.zeros((kh_, width, c_in, width, c_out), w.dtype)
    for kw in range(kw_):
        band = (wi == wo + (kw - 1)).astype(w.dtype)           # (width, width)
        b = b + band[None, :, None, :, None] * w[:, kw][:, None, :, None, :]
    return b.reshape(kh_, width * c_in, width * c_out)


def _fold_bn(bias, gamma, beta, running_mean, running_var, eps=1e-5):
    scale = gamma / jnp.sqrt(running_var + eps)
    shift = beta + scale * (bias - running_mean)
    return scale, shift


def _pick_batch_tile(n, h, target_m=512):
    """Largest divisor of n with B_TILE*H <= target_m rows of MXU M-dim."""
    best = 1
    for d in range(1, n + 1):
        if n % d == 0 and d * h <= target_m:
            best = d
    return best


def prepare_conv_block(params, W, eps=1e-5):
    """One-time parameter preprocessing (BN fold + banding + bf16 cast).

    Call once and reuse across forwards so the banded-weight build does not
    rerun per call.
    """
    c_out = params["w1"].shape[-1]
    s1, t1 = _fold_bn(params["bias1"], params["gamma1"], params["beta1"],
                      params["mean1"], params["var1"], eps)
    s2, t2 = _fold_bn(params["bias2"], params["gamma2"], params["beta2"],
                      params["mean2"], params["var2"], eps)
    # BN scale folded into the conv-weight output channels -> kernel epilogue
    # is only shift-add + ReLU.
    w1 = params["w1"] * s1[None, None, None, :]
    w2 = params["w2"] * s2[None, None, None, :]
    return {
        "b1": _make_banded_weights(w1, W).astype(jnp.bfloat16),
        "b2": _make_banded_weights(w2, W).astype(jnp.bfloat16),
        "t1": jnp.tile(t1, W).reshape(1, W * c_out).astype(jnp.float32),
        "t2": jnp.tile(t2, W).reshape(1, W * c_out).astype(jnp.float32),
    }


@jax.jit
def conv_block_apply(x_nchw, prepared):
    """Fused conv_block forward. Input/output in PyTorch NCHW layout."""
    N, c_in, H, W = x_nchw.shape
    c_out = prepared["t1"].shape[-1] // W
    assert H % 8 == 0, "H must be sublane-aligned (TODO(synk): general H)"
    bt = _pick_batch_tile(N, H)
    # TODO(synk): on v7x with large N keep N // bt >= 2 so the 'parallel' batch
    # axis shards across both TensorCores; at tiny N we prefer max M instead.

    # NCHW -> width-channel packed (N, H, W*c_in), bf16 into the MXU.
    x = jnp.transpose(x_nchw, (0, 2, 3, 1)).reshape(N, H, W * c_in)
    x = x.astype(jnp.bfloat16)

    kernel = functools.partial(_fused_conv_block_kernel,
                               B=bt, H=H, W=W, c_in=c_in, c_out=c_out)

    y = pl.pallas_call(
        kernel,
        out_shape=jax.ShapeDtypeStruct((N, H, W * c_out), jnp.float32),
        grid_spec=pltpu.PrefetchScalarGridSpec(
            num_scalar_prefetch=0,
            grid=(N // bt,),
            in_specs=[
                pl.BlockSpec((bt, H, W * c_in), lambda n: (n, 0, 0)),
                # Constant index maps: weights + BN shifts stay VMEM-resident
                # across the batch grid (no re-DMA per step).
                pl.BlockSpec((3, W * c_in, W * c_out), lambda n: (0, 0, 0)),
                pl.BlockSpec((3, W * c_out, W * c_out), lambda n: (0, 0, 0)),
                pl.BlockSpec((1, W * c_out), lambda n: (0, 0)),
                pl.BlockSpec((1, W * c_out), lambda n: (0, 0)),
            ],
            out_specs=pl.BlockSpec((bt, H, W * c_out), lambda n: (n, 0, 0)),
        ),
        compiler_params=pltpu.CompilerParams(
            dimension_semantics=("parallel",),
        ),
    )(x, prepared["b1"], prepared["b2"], prepared["t1"], prepared["t2"])

    # (N, H, W*c_out) -> (N, H, W, c_out) -> NCHW
    return jnp.transpose(y.reshape(N, H, W, c_out), (0, 3, 1, 2))


def conv_block_forward(x_nchw, params):
    """Convenience wrapper: prepare + apply (prefer caching prepare yourself)."""
    W = x_nchw.shape[-1]
    return conv_block_apply(x_nchw, prepare_conv_block(params, W))


def _ref_forward(x_nchw, params):
    """Pure-JAX reference (lax conv) for a correctness sanity check."""
    def stage(x, w, bias, gamma, beta, mean, var, eps=1e-5):
        y = jax.lax.conv_general_dilated(
            x, w, window_strides=(1, 1), padding="SAME",
            dimension_numbers=("NCHW", "HWIO", "NCHW"))
        y = y + bias[None, :, None, None]
        y = (y - mean[None, :, None, None]) / jnp.sqrt(
            var[None, :, None, None] + eps)
        y = gamma[None, :, None, None] * y + beta[None, :, None, None]
        return jnp.maximum(y, 0.0)

    x = stage(x_nchw, params["w1"], params["bias1"], params["gamma1"],
              params["beta1"], params["mean1"], params["var1"])
    x = stage(x, params["w2"], params["bias2"], params["gamma2"],
              params["beta2"], params["mean2"], params["var2"])
    return x


def make_params(key, ch_in, ch_out):
    ks = jax.random.split(key, 8)
    p = {
        # HWIO weight layout: (3, 3, C_in, C_out)
        "w1": 0.1 * jax.random.normal(ks[0], (3, 3, ch_in, ch_out), jnp.float32),
        "bias1": 0.1 * jax.random.normal(ks[1], (ch_out,), jnp.float32),
        "gamma1": 1.0 + 0.1 * jax.random.normal(ks[2], (ch_out,), jnp.float32),
        "beta1": 0.1 * jax.random.normal(ks[3], (ch_out,), jnp.float32),
        "mean1": 0.05 * jax.random.normal(ks[4], (ch_out,), jnp.float32),
        "var1": 1.0 + 0.1 * jnp.abs(jax.random.normal(ks[5], (ch_out,), jnp.float32)),
        "w2": 0.1 * jax.random.normal(ks[6], (3, 3, ch_out, ch_out), jnp.float32),
        "bias2": 0.1 * jax.random.normal(ks[7], (ch_out,), jnp.float32),
    }
    ks2 = jax.random.split(ks[7], 4)
    p["gamma2"] = 1.0 + 0.1 * jax.random.normal(ks2[0], (ch_out,), jnp.float32)
    p["beta2"] = 0.1 * jax.random.normal(ks2[1], (ch_out,), jnp.float32)
    p["mean2"] = 0.05 * jax.random.normal(ks2[2], (ch_out,), jnp.float32)
    p["var2"] = 1.0 + 0.1 * jnp.abs(jax.random.normal(ks2[3], (ch_out,), jnp.float32))
    return p


if __name__ == "__main__":
    key = jax.random.PRNGKey(0)
    k_x, k_p = jax.random.split(key)

    N, C_IN, C_OUT, H, W = 2, 4, 8, 16, 16
    x = jax.random.normal(k_x, (N, C_IN, H, W), jnp.float32)  # PyTorch NCHW
    params = make_params(k_p, C_IN, C_OUT)

    prepared = prepare_conv_block(params, W)            # one-time preprocessing
    out = jax.block_until_ready(conv_block_apply(x, prepared))
    ref = jax.block_until_ready(_ref_forward(x, params))

    assert out.shape == (N, C_OUT, H, W), out.shape
    # bf16 weights/activations with f32 accumulation: tolerance loosened vs f32.
    assert jnp.allclose(out, ref, rtol=2e-2, atol=2e-2), float(
        jnp.max(jnp.abs(out - ref)))

    print("KERNEL_OK")
</pallas_src>

<mosaic_0001>
module attributes {stable_mosaic.version = 11 : i64} {
  func.func @_fused_conv_block_kernel(%arg0: i32, %arg1: memref<2x16x64xbf16, #tpu.memory_space<vmem>>, %arg2: memref<3x64x128xbf16, #tpu.memory_space<vmem>>, %arg3: memref<3x128x128xbf16, #tpu.memory_space<vmem>>, %arg4: memref<1x128xf32, #tpu.memory_space<vmem>>, %arg5: memref<1x128xf32, #tpu.memory_space<vmem>>, %arg6: memref<2x16x128xf32, #tpu.memory_space<vmem>>) attributes {dimension_semantics = [#tpu.dimension_semantics<parallel>], iteration_bounds = array<i64: 1>, scalar_prefetch = 0 : i64, scratch_operands = 0 : i64, tpu.core_type = #tpu.core_type<tc>, window_params = [{transform_indices = @transform_0, window_bounds = array<i64: 2, 16, 64>}, {pipeline_mode = #tpu.pipeline_mode<synchronous>, transform_indices = @transform_1, window_bounds = array<i64: 3, 64, 128>}, {pipeline_mode = #tpu.pipeline_mode<synchronous>, transform_indices = @transform_2, window_bounds = array<i64: 3, 128, 128>}, {pipeline_mode = #tpu.pipeline_mode<synchronous>, transform_indices = @transform_3, window_bounds = array<i64: 1, 128>}, {pipeline_mode = #tpu.pipeline_mode<synchronous>, transform_indices = @transform_4, window_bounds = array<i64: 1, 128>}, {transform_indices = @transform_5, window_bounds = array<i64: 2, 16, 128>}]} {
    %0 = tpu.iota {dimensions = array<i32: 0>} : vector<32x1xi32>
    %c16_i32 = arith.constant 16 : i32
    %c0_i32 = arith.constant 0 : i32
    %1 = arith.cmpi eq, %c16_i32, %c0_i32 : i32
    %c1_i32 = arith.constant 1 : i32
    %2 = arith.select %1, %c1_i32, %c16_i32 : i32
    %3 = vector.broadcast %2 : i32 to vector<32x1xi32>
    %4 = arith.remsi %0, %3 : vector<32x1xi32>
    %c0_i32_0 = arith.constant 0 : i32
    %5 = vector.broadcast %c0_i32_0 : i32 to vector<32x1xi32>
    %6 = arith.cmpi ne, %4, %5 : vector<32x1xi32>
    %c0_i32_1 = arith.constant 0 : i32
    %7 = vector.broadcast %c0_i32_1 : i32 to vector<32x1xi32>
    %8 = arith.cmpi slt, %4, %7 : vector<32x1xi32>
    %c0_i32_2 = arith.constant 0 : i32
    %9 = arith.cmpi slt, %2, %c0_i32_2 : i32
    %10 = vector.broadcast %9 : i1 to vector<32x1xi1>
    %11 = vector.broadcast %10 : vector<32x1xi1> to vector<32x1xi1>
    %12 = arith.xori %8, %11 : vector<32x1xi1>
    %13 = arith.andi %12, %6 : vector<32x1xi1>
    %14 = vector.broadcast %2 : i32 to vector<32x1xi32>
    %15 = arith.addi %4, %14 : vector<32x1xi32>
    %16 = arith.select %13, %15, %4 : vector<32x1xi1>, vector<32x1xi32>
    %c1_i32_3 = arith.constant 1 : i32
    %17 = vector.broadcast %c1_i32_3 : i32 to vector<32x1xi32>
    %18 = arith.cmpi sge, %16, %17 : vector<32x1xi32>
    %c14_i32 = arith.constant 14 : i32
    %19 = vector.broadcast %c14_i32 : i32 to vector<32x1xi32>
    %20 = arith.cmpi sle, %16, %19 : vector<32x1xi32>
    %c0 = arith.constant 0 : index
    %c0_4 = arith.constant 0 : index
    %c0_5 = arith.constant 0 : index
    %21 = vector.load %arg1[%c0, %c0_4, %c0_5] : memref<2x16x64xbf16, #tpu.memory_space<vmem>>, vector<2x16x64xbf16>
    %22 = vector.shape_cast %21 : vector<2x16x64xbf16> to vector<32x64xbf16>
    %c0_6 = arith.constant 0 : index
    %c0_7 = arith.constant 0 : index
    %c0_8 = arith.constant 0 : index
    %23 = vector.load %arg2[%c0_6, %c0_7, %c0_8] : memref<3x64x128xbf16, #tpu.memory_space<vmem>>, vector<1x64x128xbf16>
    %24 = vector.shape_cast %23 : vector<1x64x128xbf16> to vector<64x128xbf16>
    %cst = arith.constant dense<0.000000e+00> : vector<32x128xf32>
    %25 = tpu.matmul %22, %24, %cst {dimension_numbers = #tpu.dot_dimension_numbers<[1], [0], [0], [1], [0, 0, 1, 1], [], []>} : vector<32x64xbf16>, vector<64x128xbf16>, vector<32x128xf32> -> vector<32x128xf32>
    %c1 = arith.constant 1 : index
    %c0_9 = arith.constant 0 : index
    %c0_10 = arith.constant 0 : index
    %26 = vector.load %arg2[%c1, %c0_9, %c0_10] : memref<3x64x128xbf16, #tpu.memory_space<vmem>>, vector<1x64x128xbf16>
    %27 = vector.shape_cast %26 : vector<1x64x128xbf16> to vector<64x128xbf16>
    %cst_11 = arith.constant dense<0.000000e+00> : vector<32x128xf32>
    %28 = tpu.matmul %22, %27, %cst_11 {dimension_numbers = #tpu.dot_dimension_numbers<[1], [0], [0], [1], [0, 0, 1, 1], [], []>} : vector<32x64xbf16>, vector<64x128xbf16>, vector<32x128xf32> -> vector<32x128xf32>
    %c2 = arith.constant 2 : index
    %c0_12 = arith.constant 0 : index
    %c0_13 = arith.constant 0 : index
    %29 = vector.load %arg2[%c2, %c0_12, %c0_13] : memref<3x64x128xbf16, #tpu.memory_space<vmem>>, vector<1x64x128xbf16>
    %30 = vector.shape_cast %29 : vector<1x64x128xbf16> to vector<64x128xbf16>
    %cst_14 = arith.constant dense<0.000000e+00> : vector<32x128xf32>
    %31 = tpu.matmul %22, %30, %cst_14 {dimension_numbers = #tpu.dot_dimension_numbers<[1], [0], [0], [1], [0, 0, 1, 1], [], []>} : vector<32x64xbf16>, vector<64x128xbf16>, vector<32x128xf32> -> vector<32x128xf32>
    %c1_i32_15 = arith.constant 1 : i32
    %32 = tpu.dynamic_rotate %25 by %c1_i32_15 dim 0 : vector<32x128xf32>, i32 -> vector<32x128xf32>
    %c31_i32 = arith.constant 31 : i32
    %33 = tpu.dynamic_rotate %31 by %c31_i32 dim 0 : vector<32x128xf32>, i32 -> vector<32x128xf32>
    %cst_16 = arith.constant 0.000000e+00 : f32
    %34 = vector.shape_cast %18 : vector<32x1xi1> to vector<32x1xi1>
    %35 = vector.broadcast %34 : vector<32x1xi1> to vector<32x128xi1>
    %36 = vector.broadcast %cst_16 : f32 to vector<32x128xf32>
    %37 = arith.select %35, %32, %36 : vector<32x128xi1>, vector<32x128xf32>
    %38 = arith.addf %28, %37 : vector<32x128xf32>
    %cst_17 = arith.constant 0.000000e+00 : f32
    %39 = vector.shape_cast %20 : vector<32x1xi1> to vector<32x1xi1>
    %40 = vector.broadcast %39 : vector<32x1xi1> to vector<32x128xi1>
    %41 = vector.broadcast %cst_17 : f32 to vector<32x128xf32>
    %42 = arith.select %40, %33, %41 : vector<32x128xi1>, vector<32x128xf32>
    %43 = arith.addf %38, %42 : vector<32x128xf32>
    %c0_18 = arith.constant 0 : index
    %c0_19 = arith.constant 0 : index
    %44 = vector.load %arg4[%c0_18, %c0_19] : memref<1x128xf32, #tpu.memory_space<vmem>>, vector<1x128xf32>
    %45 = vector.broadcast %44 : vector<1x128xf32> to vector<32x128xf32>
    %46 = arith.addf %43, %45 : vector<32x128xf32>
    %cst_20 = arith.constant 0.000000e+00 : f32
    %47 = vector.broadcast %cst_20 : f32 to vector<32x128xf32>
    %48 = arith.maximumf %46, %47 : vector<32x128xf32>
    %49 = arith.truncf %48 : vector<32x128xf32> to vector<32x128xbf16>
    %c0_21 = arith.constant 0 : index
    %c0_22 = arith.constant 0 : index
    %c0_23 = arith.constant 0 : index
    %50 = vector.load %arg3[%c0_21, %c0_22, %c0_23] : memref<3x128x128xbf16, #tpu.memory_space<vmem>>, vector<1x128x128xbf16>
    %51 = vector.shape_cast %50 : vector<1x128x128xbf16> to vector<128x128xbf16>
    %cst_24 = arith.constant dense<0.000000e+00> : vector<32x128xf32>
    %52 = tpu.matmul %49, %51, %cst_24 {dimension_numbers = #tpu.dot_dimension_numbers<[1], [0], [0], [1], [0, 0, 1, 1], [], []>} : vector<32x128xbf16>, vector<128x128xbf16>, vector<32x128xf32> -> vector<32x128xf32>
    %c1_25 = arith.constant 1 : index
    %c0_26 = arith.constant 0 : index
    %c0_27 = arith.constant 0 : index
    %53 = vector.load %arg3[%c1_25, %c0_26, %c0_27] : memref<3x128x128xbf16, #tpu.memory_space<vmem>>, vector<1x128x128xbf16>
    %54 = vector.shape_cast %53 : vector<1x128x128xbf16> to vector<128x128xbf16>
    %cst_28 = arith.constant dense<0.000000e+00> : vector<32x128xf32>
    %55 = tpu.matmul %49, %54, %cst_28 {dimension_numbers = #tpu.dot_dimension_numbers<[1], [0], [0], [1], [0, 0, 1, 1], [], []>} : vector<32x128xbf16>, vector<128x128xbf16>, vector<32x128xf32> -> vector<32x128xf32>
    %c2_29 = arith.constant 2 : index
    %c0_30 = arith.constant 0 : index
    %c0_31 = arith.constant 0 : index
    %56 = vector.load %arg3[%c2_29, %c0_30, %c0_31] : memref<3x128x128xbf16, #tpu.memory_space<vmem>>, vector<1x128x128xbf16>
    %57 = vector.shape_cast %56 : vector<1x128x128xbf16> to vector<128x128xbf16>
    %cst_32 = arith.constant dense<0.000000e+00> : vector<32x128xf32>
    %58 = tpu.matmul %49, %57, %cst_32 {dimension_numbers = #tpu.dot_dimension_numbers<[1], [0], [0], [1], [0, 0, 1, 1], [], []>} : vector<32x128xbf16>, vector<128x128xbf16>, vector<32x128xf32> -> vector<32x128xf32>
    %c1_i32_33 = arith.constant 1 : i32
    %59 = tpu.dynamic_rotate %52 by %c1_i32_33 dim 0 : vector<32x128xf32>, i32 -> vector<32x128xf32>
    %c31_i32_34 = arith.constant 31 : i32
    %60 = tpu.dynamic_rotate %58 by %c31_i32_34 dim 0 : vector<32x128xf32>, i32 -> vector<32x128xf32>
    %cst_35 = arith.constant 0.000000e+00 : f32
    %61 = vector.shape_cast %18 : vector<32x1xi1> to vector<32x1xi1>
    %62 = vector.broadcast %61 : vector<32x1xi1> to vector<32x128xi1>
    %63 = vector.broadcast %cst_35 : f32 to vector<32x128xf32>
    %64 = arith.select %62, %59, %63 : vector<32x128xi1>, vector<32x128xf32>
    %65 = arith.addf %55, %64 : vector<32x128xf32>
    %cst_36 = arith.constant 0.000000e+00 : f32
    %66 = vector.shape_cast %20 : vector<32x1xi1> to vector<32x1xi1>
    %67 = vector.broadcast %66 : vector<32x1xi1> to vector<32x128xi1>
    %68 = vector.broadcast %cst_36 : f32 to vector<32x128xf32>
    %69 = arith.select %67, %60, %68 : vector<32x128xi1>, vector<32x128xf32>
    %70 = arith.addf %65, %69 : vector<32x128xf32>
    %c0_37 = arith.constant 0 : index
    %c0_38 = arith.constant 0 : index
    %71 = vector.load %arg5[%c0_37, %c0_38] : memref<1x128xf32, #tpu.memory_space<vmem>>, vector<1x128xf32>
    %72 = vector.broadcast %71 : vector<1x128xf32> to vector<32x128xf32>
    %73 = arith.addf %70, %72 : vector<32x128xf32>
    %cst_39 = arith.constant 0.000000e+00 : f32
    %74 = vector.broadcast %cst_39 : f32 to vector<32x128xf32>
    %75 = arith.maximumf %73, %74 : vector<32x128xf32>
    %76 = vector.shape_cast %75 : vector<32x128xf32> to vector<2x16x128xf32>
    %c0_40 = arith.constant 0 : index
    %c0_41 = arith.constant 0 : index
    %c0_42 = arith.constant 0 : index
    %77 = vector.load %arg6[%c0_40, %c0_41, %c0_42] : memref<2x16x128xf32, #tpu.memory_space<vmem>>, vector<2x16x128xf32>
    tpu.vector_store %arg6[%c0_40, %c0_41, %c0_42], %76 {strides = array<i32>} : memref<2x16x128xf32, #tpu.memory_space<vmem>>, vector<2x16x128xf32>,
    return
  }
  func.func @transform_0(%arg0: i32) -> (i32, i32, i32) {
    %c0_i32 = arith.constant 0 : i32
    %c0_i32_0 = arith.constant 0 : i32
    %c0_i32_1 = arith.constant 0 : i32
    return %arg0, %c0_i32, %c0_i32_0 : i32, i32, i32
  }
  func.func @transform_1(%arg0: i32) -> (i32, i32, i32) {
    %c0_i32 = arith.constant 0 : i32
    %c0_i32_0 = arith.constant 0 : i32
    %c0_i32_1 = arith.constant 0 : i32
    %c0_i32_2 = arith.constant 0 : i32
    return %c0_i32, %c0_i32_0, %c0_i32_1 : i32, i32, i32
  }
  func.func @transform_2(%arg0: i32) -> (i32, i32, i32) {
    %c0_i32 = arith.constant 0 : i32
    %c0_i32_0 = arith.constant 0 : i32
    %c0_i32_1 = arith.constant 0 : i32
    %c0_i32_2 = arith.constant 0 : i32
    return %c0_i32, %c0_i32_0, %c0_i32_1 : i32, i32, i32
  }
  func.func @transform_3(%arg0: i32) -> (i32, i32) {
    %c0_i32 = arith.constant 0 : i32
    %c0_i32_0 = arith.constant 0 : i32
    %c0_i32_1 = arith.constant 0 : i32
    return %c0_i32, %c0_i32_0 : i32, i32
  }
  func.func @transform_4(%arg0: i32) -> (i32, i32) {
    %c0_i32 = arith.constant 0 : i32
    %c0_i32_0 = arith.constant 0 : i32
    %c0_i32_1 = arith.constant 0 : i32
    return %c0_i32, %c0_i32_0 : i32, i32
  }
  func.func @transform_5(%arg0: i32) -> (i32, i32, i32) {
    %c0_i32 = arith.constant 0 : i32
    %c0_i32_0 = arith.constant 0 : i32
    %c0_i32_1 = arith.constant 0 : i32
    return %arg0, %c0_i32, %c0_i32_0 : i32, i32, i32
  }
}

</mosaic_0001>

<bundles_post_ra>
// kernel: conv_block_apply.1
= control target key start
LH: loop header
LB: loop body
LE: loop exit
PB: predicated region body
PF: predicated region fallthrough
CT: control target
= control target key end

     0   :  { %vm128_vm0 = vcmask 523264   ;;  %v21_v31 = vlaneseq  ;;  %s1323_s1 = inlined_call_operand.vmem [shape: bf16[3,64,128], index: 1, kind: input, shape index: {}]   ;;  %s1324_s0 = inlined_call_operand.vmem [shape: bf16[2,16,64], index: 0, kind: input, shape index: {}]   ;;  %s1325_s2 = inlined_call_operand.vmem [shape: bf16[3,128,128], index: 2, kind: input, shape index: {}]   ;;  %s1326_s3 = inlined_call_operand.vmem [shape: f32[1,128], index: 3, kind: input, shape index: {}]   ;;  %s1327_s4 = inlined_call_operand.vmem [shape: f32[1,128], index: 4, kind: input, shape index: {}]   ;;  %s1328_s5 = inlined_call_operand.vmem [shape: f32[2,16,128], index: 5, kind: output, shape index: {}]  }
   0x1   :  { %v1041_v0 = vld [vmem:[%s1323_s1] sm:$0xff]   ;;  %v1042_v1 = vld [vmem:[%s1323_s1 + $0x8] sm:$0xff]   ;;  %v1043_v3 = vld [vmem:[%s1323_s1 + $0x10] sm:$0xff]  }
   0x2   :  { %945 = vmatprep.subr.bf16.mxu0 %v1041_v0  ;;  %v1044_v2 = vld [vmem:[%s1323_s1 + $0x40] sm:$0xff]   ;;  %v1047_v5 = vld [vmem:[%s1323_s1 + $0x48] sm:$0xff]   ;;  %v1045_v6 = vld [vmem:[%s1323_s1 + $0x18] sm:$0xff]   ;;  %v1211_v33 = vshrl.u32 %v21_v31, 7 }
   0x3   :  { %946 = vmatpush3.bf16.msra.mxu0 %v1041_v0  ;;  %957 = vmatprep.subr.bf16.mxu1 %v1044_v2  ;;  %v1046_v4 = vld [vmem:[%s1324_s0] sm:$0xff]   ;;  %v1050_v7 = vld [vmem:[%s1323_s1 + $0x50] sm:$0xff]   ;;  %v1052_v8 = vld [vmem:[%s1323_s1 + $0x58] sm:$0xff]  }
   0x4   :  { %947 = vmatprep.subr.bf16.mxu0 %v1042_v1  ;;  %958 = vmatpush3.bf16.msra.mxu1 %v1044_v2  ;;  %v1049_v9 = vld [vmem:[%s1323_s1 + $0x20] sm:$0xff]   ;;  %v1048_v10 = vld [vmem:[%s1324_s0 + $0x8] sm:$0xff]   ;;  %v1053_v13 = vld [vmem:[%s1323_s1 + $0x30] sm:$0xff]   ;;  %vm279_vm1 = vcmp.lt.s32.totalorder %v1211_v33, 1  ;;  %v24_v44 = vadd.s32 16, %v1211_v33  ;;  %vm288_vm2 = vcmp.lt.s32.totalorder %v1211_v33, 7 }
   0x5   :  { %953 = vmatprep.mubr.msk.bf16.mxu0 %vm128_vm0, %v1046_v4  ;;  %959 = vmatprep.subr.bf16.mxu1 %v1047_v5  ;;  %v1051_v11 = vld [vmem:[%s1323_s1 + $0x28] sm:$0xff]   ;;  %v1055_v12 = vld [vmem:[%s1325_s2] sm:$0xff]   ;;  %v1054_v14 = vld [vmem:[%s1323_s1 + $0x38] sm:$0xff]   ;;  %v25_v58 = vadd.s32 24, %v1211_v33  ;;  %v30_v60 = vand.u32 15, %v1211_v33  ;;  %v23_v61 = vadd.s32 8, %v1211_v33 }
   0x6   :  { %965 = vmatprep.mubr.msk.bf16.mxu1 %vm128_vm0, %v1046_v4  ;;  %v1056_v15 = vld [vmem:[%s1325_s2 + $0x80] sm:$0xff]   ;;  %v1057_v16 = vld [vmem:[%s1325_s2 + $0x8] sm:$0xff]   ;;  %v1059_v18 = vld [vmem:[%s1325_s2 + $0x10] sm:$0xff]   ;;  %v44_v56 = vand.u32 15, %v24_v44 }
   0x7   :  { %948 = vmatpush3.bf16.msra.mxu0 %v1042_v1  ;;  %v1058_v17 = vld [vmem:[%s1325_s2 + $0x88] sm:$0xff]   ;;  %v1060_v19 = vld [vmem:[%s1325_s2 + $0x90] sm:$0xff]   ;;  %v1061_v20 = vld [vmem:[%s1325_s2 + $0x18] sm:$0xff]   ;;  %v51_v63 = vand.u32 15, %v25_v58  ;;  %vm1239_vm4 = vcmp.ge.s32.totalorder %v30_v60, 1  ;;  %v37_v1 = vand.u32 15, %v23_v61 }
   0x8   :  { %949 = vmatprep.subr.bf16.mxu0 %v1043_v3  ;;  %960 = vmatpush3.bf16.msra.mxu1 %v1047_v5  ;;  %v1062_v21 = vld [vmem:[%s1325_s2 + $0x98] sm:$0xff]   ;;  %v1063_v22 = vld [vmem:[%s1325_s2 + $0x20] sm:$0xff]   ;;  %v1065_v24 = vld [vmem:[%s1325_s2 + $0x28] sm:$0xff]   ;;  %vm1235_vm3 = vcmp.ge.s32.totalorder %v44_v56, 1 }
   0x9   :  { %961 = vmatprep.subr.bf16.mxu1 %v1050_v7  ;;  %v1064_v23 = vld [vmem:[%s1325_s2 + $0xa0] sm:$0xff]   ;;  %v1066_v25 = vld [vmem:[%s1325_s2 + $0xa8] sm:$0xff]   ;;  %v1067_v26 = vld [vmem:[%s1325_s2 + $0x30] sm:$0xff]   ;;  %vm1247_vm5 = vcmp.le.s32.totalorder %v51_v63, 14  ;;  %vm1254_vm6 = vcmp.le.s32.totalorder %v37_v1, 14 }
   0xa   :  { %v1068_v27 = vld [vmem:[%s1325_s2 + $0xb0] sm:$0xff]   ;;  %v1069_v28 = vld [vmem:[%s1325_s2 + $0x38] sm:$0xff]   ;;  %v1208_v30 = vld [vmem:[%s1325_s2 + $0x40] sm:$0xff]  }
   0xb   :  { %950 = vmatpush3.bf16.msra.mxu0 %v1043_v3  ;;  %v1070_v29 = vld [vmem:[%s1325_s2 + $0xb8] sm:$0xff]  }
   0xc   :  { %951 = vmatprep.subr.bf16.mxu0 %v1045_v6  ;;  %962 = vmatpush3.bf16.msra.mxu1 %v1050_v7 }
   0xd   :  { %963 = vmatprep.subr.bf16.mxu1 %v1052_v8 }
   0xf   :  { %952 = vmatpush3.bf16.msra.mxu0 %v1045_v6 }
  0x10   :  { %969 = vmatprep.subr.bf16.mxu0 %v1049_v9  ;;  %964 = vmatpush3.bf16.msra.mxu1 %v1052_v8  ;;  %v839_v8 = vld [vmem:[%s1326_s3] ss:$0 sm:$0xff] }
  0x11   :  { %981 = vmatprep.subr.bf16.mxu1 %v1055_v12 }
  0x12   :  { %954 = vmatmul.mubr.msk.bf16.vlgmr.msra.gmra.mrb[0].mxu0 %vm128_vm0, %v1048_v10 }
  0x13   :  { %970 = vmatpush3.bf16.msra.mxu0 %v1049_v9  ;;  %977 = vmatprep.mubr.msk.bf16.mxu0 %vm128_vm0, %v1046_v4 }
  0x14   :  { %971 = vmatprep.subr.bf16.mxu0 %v1051_v11  ;;  %966 = vmatmul.mubr.msk.bf16.vlgmr.msra.gmra.mrb[0].mxu1 %vm128_vm0, %v1048_v10 }
  0x15   :  { %982 = vmatpush3.bf16.msra.mxu1 %v1055_v12 }
  0x16   :  { %983 = vmatprep.subr.bf16.mxu1 %v1057_v16 }
  0x17   :  { %972 = vmatpush3.bf16.msra.mxu0 %v1051_v11 }
  0x18   :  { %973 = vmatprep.subr.bf16.mxu0 %v1053_v13 }
  0x19   :  { %984 = vmatpush3.bf16.msra.mxu1 %v1057_v16 }
  0x1a   :  { %985 = vmatprep.subr.bf16.mxu1 %v1059_v18 }
  0x1b   :  { %974 = vmatpush3.bf16.msra.mxu0 %v1053_v13 }
  0x1c   :  { %975 = vmatprep.subr.bf16.mxu0 %v1054_v14 }
  0x1d   :  { %986 = vmatpush3.bf16.msra.mxu1 %v1059_v18 }
  0x1e   :  { %987 = vmatprep.subr.bf16.mxu1 %v1061_v20 }
  0x1f   :  { %976 = vmatpush3.bf16.msra.mxu0 %v1054_v14 }
  0x20   :  { %1001 = vmatprep.subr.bf16.mxu0 %v1056_v15 }
  0x21   :  { %988 = vmatpush3.bf16.msra.mxu1 %v1061_v20 }
  0x22   :  { %978 = vmatmul.mubr.msk.bf16.vlgmr.msra.gmra.mrb[4].mxu0 %vm128_vm0, %v1048_v10  ;;  %989 = vmatprep.subr.bf16.mxu1 %v1063_v22 }
  0x23   :  { %1002 = vmatpush3.bf16.msra.mxu0 %v1056_v15 }
  0x24   :  { %1003 = vmatprep.subr.bf16.mxu0 %v1058_v17 }
  0x25   :  { %990 = vmatpush3.bf16.msra.mxu1 %v1063_v22 }
  0x26   :  { %991 = vmatprep.subr.bf16.mxu1 %v1065_v24 }
  0x27   :  { %1004 = vmatpush3.bf16.msra.mxu0 %v1058_v17 }
  0x28   :  { %1005 = vmatprep.subr.bf16.mxu0 %v1060_v19 }
  0x29   :  { %992 = vmatpush3.bf16.msra.mxu1 %v1065_v24 }
  0x2a   :  { %993 = vmatprep.subr.bf16.mxu1 %v1067_v26 }
  0x2b   :  { %1006 = vmatpush3.bf16.msra.mxu0 %v1060_v19 }
  0x2c   :  { %1007 = vmatprep.subr.bf16.mxu0 %v1062_v21 }
  0x2d   :  { %994 = vmatpush3.bf16.msra.mxu1 %v1067_v26 }
  0x2e   :  { %995 = vmatprep.subr.bf16.mxu1 %v1069_v28 }
  0x2f   :  { %1008 = vmatpush3.bf16.msra.mxu0 %v1062_v21 }
  0x30   :  { %1009 = vmatprep.subr.bf16.mxu0 %v1064_v23 }
  0x31   :  { %996 = vmatpush3.bf16.msra.mxu1 %v1069_v28 }
  0x32   :  { %1021 = vmatprep.subr.bf16.mxu1 %v1208_v30 }
  0x33   :  { %1010 = vmatpush3.bf16.msra.mxu0 %v1064_v23 }
  0x34   :  { %1011 = vmatprep.subr.bf16.mxu0 %v1066_v25 }
  0x37   :  { %1012 = vmatpush3.bf16.msra.mxu0 %v1066_v25 }
  0x38   :  { %1013 = vmatprep.subr.bf16.mxu0 %v1068_v27 }
  0x3b   :  { %1014 = vmatpush3.bf16.msra.mxu0 %v1068_v27 }
  0x3c   :  { %1015 = vmatprep.subr.bf16.mxu0 %v1070_v29 }
  0x3f   :  { %1016 = vmatpush3.bf16.msra.mxu0 %v1070_v29 }
  0xe5   :  { %v955_v32 = vpop.f32.mrb[0].mxu0 }
  0xe6   :  { %v277_v34 = vrot.slane %v955_v32, 7  ;;  %v169_v35 = vpop.f32.mrb[1].mxu0  ;;  %v1072_v32 = vld [vmem:[%s1325_s2 + $0x48] sm:$0xff]  }
  0xe7   :  { %v275_v36 = vrot.slane %v169_v35, 7  ;;  %v956_v37 = vpop.f32.mrb[2].mxu0  ;;  %v967_v40 = vpop.f32.mrb[0].mxu1  ;;  %v1074_v35 = vld [vmem:[%s1325_s2 + $0x58] sm:$0xff]  }
  0xe8   :  { %v278_v38 = vrot.slane %v956_v37, 7  ;;  %v172_v39 = vpop.f32.mrb[3].mxu0  ;;  %v286_v42 = vrot.slane %v967_v40, 1  ;;  %v260_v43 = vpop.f32.mrb[1].mxu1  ;;  %v1077_v37 = vld [vmem:[%s1325_s2 + $0x70] sm:$0xff]  }
  0xe9   :  { %v276_v41 = vrot.slane %v172_v39, 7  ;;  %v284_v45 = vrot.slane %v260_v43, 1  ;;  %v968_v46 = vpop.f32.mrb[2].mxu1 }
  0xea   :  { %v283_v47 = vsel %vm279_vm1, %v278_v38, %v275_v36  ;;  %v280_v48 = vsel %vm279_vm1, %v277_v34, %v278_v38  ;;  %v287_v49 = vrot.slane %v968_v46, 1  ;;  %v263_v50 = vpop.f32.mrb[3].mxu1  ;;  %v1078_v38 = vld [vmem:[%s1325_s2 + $0x78] sm:$0xff]  }
  0xeb   :  { %v281_v51 = vsel %vm279_vm1, %v276_v41, %v277_v34  ;;  %v282_v52 = vsel %vm279_vm1, %v275_v36, %v276_v41  ;;  %v285_v53 = vrot.slane %v263_v50, 1  ;;  %v301_v5 = vsel %vm1239_vm4, %v283_v47, 0.0  ;;  %v1073_v34 = vld [vmem:[%s1325_s2 + $0x50] sm:$0xff]   ;;  %v1075_v36 = vld [vmem:[%s1325_s2 + $0x60] sm:$0xff]  }
  0xec   :  { %v289_v54 = vsel %vm288_vm2, %v286_v42, %v287_v49  ;;  %v292_v55 = vsel %vm288_vm2, %v287_v49, %v284_v45  ;;  %v303_v2 = vsel %vm1235_vm3, %v281_v51, 0.0 }
  0xed   :  { %v291_v57 = vsel %vm288_vm2, %v284_v45, %v285_v53  ;;  %v290_v59 = vsel %vm288_vm2, %v285_v53, %v286_v42  ;;  %v389_v16 = vsel %vm1247_vm5, %v292_v55, 0.0 }
  0xee   :  { %v387_v20 = vsel %vm1254_vm6, %v290_v59, 0.0 }
  0xf5   :  { %v979_v3 = vpop.f32.mrb[4].mxu0 }
  0xf6   :  { %v372_v4 = vadd.f32 %v979_v3, %v303_v2  ;;  %v363_v6 = vpop.f32.mrb[5].mxu0 }
  0xf7   :  { %v364_v9 = vadd.f32 %v363_v6, %v301_v5  ;;  %v980_v10 = vpop.f32.mrb[6].mxu0  ;;  %v896_v6 = vld [vmem:[%s1327_s4] ss:$0 sm:$0xff] }
  0xf8   :  { %v392_v12 = vadd.f32 %v372_v4, %v289_v54  ;;  %v375_v13 = vadd.f32 %v980_v10, %v280_v48  ;;  %v366_v14 = vpop.f32.mrb[7].mxu0 }
  0xf9   :  { %v390_v15 = vadd.f32 %v364_v9, %v291_v57  ;;  %v367_v17 = vadd.f32 %v366_v14, %v282_v52 }
  0xfa   :  { %v403_v18 = vadd.f32 %v839_v8, %v392_v12  ;;  %v393_v19 = vadd.f32 %v389_v16, %v375_v13 }
  0xfb   :  { %v401_v21 = vadd.f32 %v839_v8, %v390_v15  ;;  %v391_v22 = vadd.f32 %v387_v20, %v367_v17 }
  0xfc   :  { %v404_v23 = vadd.f32 %v839_v8, %v393_v19  ;;  %v407_v25 = vmax.f32 %v403_v18, 0.0 }
  0xfd   :  { %v402_v24 = vadd.f32 %v839_v8, %v391_v22  ;;  %v405_v27 = vmax.f32 %v401_v21, 0.0 }
  0xfe   :  { %v408_v26 = vmax.f32 %v404_v23, 0.0 }
  0xff   :  { %v406_v28 = vmax.f32 %v402_v24, 0.0 }
 0x100   :  { %v410_v29 = vpack.c.bf16 %v408_v26, %v407_v25 }
 0x101   :  { %v409_v31 = vpack.c.bf16 %v406_v28, %v405_v27 }
 0x103   :  { %997 = vmatprep.mubr.bf16.mxu1 %v409_v31  ;;  %1017 = vmatprep.mubr.bf16.mxu0 %v409_v31 }
 0x104   :  { %998 = vmatmul.mubr.bf16.vlgmr.msra.gmra.mrb[4].mxu1 %v410_v29  ;;  %1018 = vmatmul.mubr.bf16.vlgmr.msra.gmra.mrb[8].mxu0 %v410_v29 }
 0x105   :  { %1022 = vmatpush3.bf16.msra.mxu1 %v1208_v30  ;;  %1037 = vmatprep.mubr.bf16.mxu1 %v409_v31  ;;  %v1076_v30 = vld [vmem:[%s1325_s2 + $0x68] sm:$0xff]  }
 0x106   :  { %1023 = vmatprep.subr.bf16.mxu1 %v1072_v32 }
 0x109   :  { %1024 = vmatpush3.bf16.msra.mxu1 %v1072_v32 }
 0x10a   :  { %1025 = vmatprep.subr.bf16.mxu1 %v1073_v34 }
 0x10d   :  { %1026 = vmatpush3.bf16.msra.mxu1 %v1073_v34 }
 0x10e   :  { %1027 = vmatprep.subr.bf16.mxu1 %v1074_v35 }
 0x111   :  { %1028 = vmatpush3.bf16.msra.mxu1 %v1074_v35 }
 0x112   :  { %1029 = vmatprep.subr.bf16.mxu1 %v1075_v36 }
 0x115   :  { %1030 = vmatpush3.bf16.msra.mxu1 %v1075_v36 }
 0x116   :  { %1031 = vmatprep.subr.bf16.mxu1 %v1076_v30 }
 0x119   :  { %1032 = vmatpush3.bf16.msra.mxu1 %v1076_v30 }
 0x11a   :  { %1033 = vmatprep.subr.bf16.mxu1 %v1077_v37 }
 0x11d   :  { %1034 = vmatpush3.bf16.msra.mxu1 %v1077_v37 }
 0x11e   :  { %1035 = vmatprep.subr.bf16.mxu1 %v1078_v38 }
 0x121   :  { %1036 = vmatpush3.bf16.msra.mxu1 %v1078_v38 }
 0x124   :  { %1038 = vmatmul.mubr.bf16.vlgmr.msra.gmra.mrb[8].mxu1 %v410_v29 }
 0x1d7   :  { %v999_v39 = vpop.f32.mrb[4].mxu1  ;;  %v1019_v40 = vpop.f32.mrb[8].mxu0 }
 0x1d8   :  { %v509_v41 = vpop.f32.mrb[5].mxu1  ;;  %v640_v42 = vpop.f32.mrb[9].mxu0  ;;  %v657_v47 = vrot.slane %v999_v39, 7  ;;  %v665_v48 = vrot.slane %v1019_v40, 1 }
 0x1d9   :  { %v655_v43 = vrot.slane %v509_v41, 7  ;;  %v663_v44 = vrot.slane %v640_v42, 1  ;;  %v1000_v45 = vpop.f32.mrb[6].mxu1  ;;  %v1020_v46 = vpop.f32.mrb[10].mxu0 }
 0x1da   :  { %v658_v49 = vrot.slane %v1000_v45, 7  ;;  %v666_v50 = vrot.slane %v1020_v46, 1  ;;  %v512_v51 = vpop.f32.mrb[7].mxu1  ;;  %v643_v52 = vpop.f32.mrb[11].mxu0 }
 0x1db   :  { %v656_v53 = vrot.slane %v512_v51, 7  ;;  %v664_v54 = vrot.slane %v643_v52, 1 }
 0x1dc   :  { %v667_v55 = vsel %vm288_vm2, %v665_v48, %v666_v50  ;;  %v662_v56 = vsel %vm279_vm1, %v658_v49, %v655_v43  ;;  %v659_v57 = vsel %vm279_vm1, %v657_v47, %v658_v49  ;;  %v670_v58 = vsel %vm288_vm2, %v666_v50, %v663_v44 }
 0x1dd   :  { %v668_v59 = vsel %vm288_vm2, %v664_v54, %v665_v48  ;;  %v660_v60 = vsel %vm279_vm1, %v656_v53, %v657_v47  ;;  %v669_v61 = vsel %vm288_vm2, %v663_v44, %v664_v54  ;;  %v661_v63 = vsel %vm279_vm1, %v655_v43, %v656_v53 }
 0x1de   :  { %v673_v1 = vsel %vm1235_vm3, %v660_v60, 0.0  ;;  %v671_v4 = vsel %vm1239_vm4, %v662_v56, 0.0  ;;  %v775_v62 = vsel %vm1247_vm5, %v670_v58, 0.0  ;;  %v773_v0 = vsel %vm1254_vm6, %v668_v59, 0.0 }
 0x1f7   :  { %v1039_v2 = vpop.f32.mrb[8].mxu1 }
 0x1f8   :  { %v766_v3 = vadd.f32 %v1039_v2, %v673_v1  ;;  %v757_v5 = vpop.f32.mrb[9].mxu1 }
 0x1f9   :  { %v758_v8 = vadd.f32 %v757_v5, %v671_v4  ;;  %v1040_v9 = vpop.f32.mrb[10].mxu1 }
 0x1fa   :  { %v778_v10 = vadd.f32 %v766_v3, %v667_v55  ;;  %v769_v12 = vadd.f32 %v1040_v9, %v659_v57  ;;  %v760_v13 = vpop.f32.mrb[11].mxu1 }
 0x1fb   :  { %v776_v33 = vadd.f32 %v758_v8, %v669_v61  ;;  %v761_v14 = vadd.f32 %v760_v13, %v661_v63 }
 0x1fc   :  { %v789_v15 = vadd.f32 %v896_v6, %v778_v10  ;;  %v779_v16 = vadd.f32 %v775_v62, %v769_v12 }
 0x1fd   :  { %v787_v17 = vadd.f32 %v896_v6, %v776_v33  ;;  %v777_v18 = vadd.f32 %v773_v0, %v761_v14 }
 0x1fe   :  { %v793_v19 = vmax.f32 %v789_v15, 0.0  ;;  %v790_v20 = vadd.f32 %v896_v6, %v779_v16 }
 0x1ff   :  { %v791_v21 = vmax.f32 %v787_v17, 0.0  ;;  %v788_v22 = vadd.f32 %v896_v6, %v777_v18 }
 0x200   :  { %797 = vst [vmem:[%s1328_s5 + $0x10] sm:$0xff] %v793_v19  ;;  %v794_v23 = vmax.f32 %v790_v20, 0.0 }
 0x201   :  { %795 = vst [vmem:[%s1328_s5] sm:$0xff] %v791_v21  ;;  %v792_v7 = vmax.f32 %v788_v22, 0.0 }
 0x202   :  { %798 = vst [vmem:[%s1328_s5 + $0x18] sm:$0xff] %v794_v23 }
 0x203   :  { %796 = vst [vmem:[%s1328_s5 + $0x8] sm:$0xff] %v792_v7 }

</bundles_post_ra>
